<compile_context>
chip_gen: v5e
topology: v5e:2x2
jax: 0.10.0
libtpu: 0.0.40
codegen_flags: <defaults>
</compile_context>

<pallas_src>
import numpy as np
import jax
import jax.numpy as jnp
from jax.experimental import pallas as pl
from jax.experimental.pallas import tpu as pltpu

LANES = 128
SUBLANES = 8
TILE = SUBLANES * LANES      # 1024 queries per grid step


# ----------------------------------------------------------------------------
# Pallas kernel factory (table baked in as scalar immediates)
# ----------------------------------------------------------------------------
def _make_interp_kernel(xs, ys, n):
    xs = np.asarray(xs, dtype=np.float64)
    ys = np.asarray(ys, dtype=np.float64)
    dis = 1.0 / (n - 1)
    inv_dis = float(1.0 / dis)

    # Per-interval scalars, precomputed in float64, emitted as f32 immediates.
    x_lo = [float(xs[j]) for j in range(n - 1)]
    x_hi = [float(xs[j + 1]) for j in range(n - 1)]
    y_lo_over_w = [float(ys[j] / (xs[j + 1] - xs[j])) for j in range(n - 1)]
    y_hi_over_w = [float(ys[j + 1] / (xs[j + 1] - xs[j])) for j in range(n - 1)]

    def kernel(q_ref, o_ref):
        x = q_ref[...]                                    # (8, 128) f32 queries
        # i = min(n-2, int(x / dis + 1e-5)); elementwise, truncation toward 0.
        # TODO(synk): negative queries clamp to interval 0 here; the torch code
        # would compute a negative index and wrap around (fringe behaviour).
        t = x * jnp.float32(inv_dis) + jnp.float32(1e-5)
        idx = jnp.clip(t.astype(jnp.int32), 0, n - 2)

        out = jnp.zeros_like(x)
        for j in range(n - 1):                            # static unroll, n-1 small
            # (xs[j+1] - x)/w * ys[j] + (x - xs[j])/w * ys[j+1]
            v_j = (jnp.float32(x_hi[j]) - x) * jnp.float32(y_lo_over_w[j]) \
                + (x - jnp.float32(x_lo[j])) * jnp.float32(y_hi_over_w[j])
            out = jnp.where(idx == j, v_j, out)
        o_ref[...] = out                                  # lane-dense store

    return kernel


# ----------------------------------------------------------------------------
# Module wrapper
# ----------------------------------------------------------------------------
class Interp1dPackFastPallas:
    """Pallas/TPU port of Interp1dPackFast with a batched query path."""

    def __init__(self, samples, verbose=False):
        self.n = n = len(samples)
        xs, ys = [], []
        for i in range(n):
            s = np.asarray(samples[i], dtype=np.float64)
            xs.append(s[0])
            y = s[1:]
            if y.shape[0] == 1:
                y = y[0]
            ys.append(y)
        self.xs = np.asarray(xs, dtype=np.float64)
        self.ys = np.asarray(ys, dtype=np.float64)
        if verbose:
            for i in range(n):
                print(self.xs[i], self.ys[i])
        self.dis = 1.0 / (n - 1)

        # TODO(synk): vector-valued ys (samples[i][1:] longer than 1) are not
        # implemented by this kernel; only scalar y per sample is supported.
        assert self.ys.ndim == 1, "vector-valued ys not supported"

        self._kernel = _make_interp_kernel(self.xs, self.ys, n)

    def _pallas_eval(self, q2d):
        rows = q2d.shape[0]
        grid = rows // SUBLANES
        return pl.pallas_call(
            self._kernel,
            out_shape=jax.ShapeDtypeStruct((rows, LANES), jnp.float32),
            grid_spec=pltpu.PrefetchScalarGridSpec(
                num_scalar_prefetch=0,
                grid=(grid,),
                in_specs=[pl.BlockSpec((SUBLANES, LANES), lambda i: (i, 0))],
                out_specs=pl.BlockSpec((SUBLANES, LANES), lambda i: (i, 0)),
            ),
            compiler_params=pltpu.CompilerParams(
                dimension_semantics=("parallel",)),
        )(q2d)

    def evaluate(self, xq):
        """Batched interpolation at every query in the 1-D array xq."""
        xq = jnp.asarray(xq, dtype=jnp.float32).reshape(-1)
        nq = xq.shape[0]
        padded = ((nq + TILE - 1) // TILE) * TILE
        xq_p = jnp.pad(xq, (0, padded - nq))
        out = self._pallas_eval(xq_p.reshape(padded // LANES, LANES))
        return out.reshape(-1)[:nq]

    def __call__(self, b):
        # forward(b): only b[0] matters; returns a 0-d f32 scalar.
        b = jnp.asarray(b, dtype=jnp.float32).reshape(-1)
        return self.evaluate(b[:1])[0]


# ----------------------------------------------------------------------------
# Pure-numpy reference of the PyTorch forward (for verification)
# ----------------------------------------------------------------------------
def forward_reference(b_np, xs, ys):
    n = len(xs)
    dis = 1.0 / (n - 1)
    x = float(b_np[0])
    i = min(n - 2, int(x / dis + 1e-5))
    wa = x - xs[i]
    wb = xs[i + 1] - x
    w = xs[i + 1] - xs[i]
    return np.float32(wb / w * ys[i] + wa / w * ys[i + 1])


def batch_reference(xq_np, xs, ys):
    return np.array([forward_reference([x], xs, ys) for x in xq_np],
                    dtype=np.float32)


if __name__ == "__main__":
    # deterministic samples: n = 8 points, evenly spaced on [0, 1] (matches dis)
    n = 8
    xs = np.linspace(0.0, 1.0, n)
    ys = np.sin(3.0 * xs) + 0.25 * xs
    samples = [np.array([xs[i], ys[i]], dtype=np.float64) for i in range(n)]

    module = Interp1dPackFastPallas(samples)

    key = jax.random.PRNGKey(0)
    k1, k2 = jax.random.split(key)

    # single-query forward (module semantics: only b[0] is used)
    b = jax.random.uniform(k1, (8,), dtype=jnp.float32, minval=0.0, maxval=1.0)
    out = jax.block_until_ready(module(b))
    ref = forward_reference(np.asarray(b), module.xs, module.ys)
    np.testing.assert_allclose(np.asarray(out), ref, rtol=1e-4, atol=1e-5)

    # batched query path: 2048 queries -> two lane-dense (8,128) grid steps
    xq = jax.random.uniform(k2, (2048,), dtype=jnp.float32,
                            minval=0.0, maxval=1.05)
    out_b = jax.block_until_ready(module.evaluate(xq))
    ref_b = batch_reference(np.asarray(xq), module.xs, module.ys)
    np.testing.assert_allclose(np.asarray(out_b), ref_b, rtol=1e-4, atol=1e-5)

    print("KERNEL_OK")
</pallas_src>

<mosaic_0001>
module attributes {stable_mosaic.version = 11 : i64} {
  func.func @kernel(%arg0: i32, %arg1: memref<8x128xf32, #tpu.memory_space<vmem>>, %arg2: memref<8x128xf32, #tpu.memory_space<vmem>>) attributes {dimension_semantics = [#tpu.dimension_semantics<parallel>], iteration_bounds = array<i64: 1>, scalar_prefetch = 0 : i64, scratch_operands = 0 : i64, tpu.core_type = #tpu.core_type<tc>, window_params = [{transform_indices = @transform_0, window_bounds = array<i64: 8, 128>}, {transform_indices = @transform_1, window_bounds = array<i64: 8, 128>}]} {
    %c0 = arith.constant 0 : index
    %c0_0 = arith.constant 0 : index
    %0 = vector.load %arg1[%c0, %c0_0] : memref<8x128xf32, #tpu.memory_space<vmem>>, vector<8x128xf32>
    %cst = arith.constant 7.000000e+00 : f32
    %1 = vector.broadcast %cst : f32 to vector<8x128xf32>
    %2 = arith.mulf %0, %1 : vector<8x128xf32>
    %cst_1 = arith.constant 9.99999974E-6 : f32
    %3 = vector.broadcast %cst_1 : f32 to vector<8x128xf32>
    %4 = arith.addf %2, %3 : vector<8x128xf32>
    %5 = arith.fptosi %4 : vector<8x128xf32> to vector<8x128xi32>
    %c0_i32 = arith.constant 0 : i32
    %c6_i32 = arith.constant 6 : i32
    %6 = vector.broadcast %c0_i32 : i32 to vector<8x128xi32>
    %7 = arith.maxsi %6, %5 : vector<8x128xi32>
    %8 = vector.broadcast %c6_i32 : i32 to vector<8x128xi32>
    %9 = arith.minsi %8, %7 : vector<8x128xi32>
    %cst_2 = arith.constant 0.000000e+00 : f32
    %10 = vector.broadcast %cst_2 : f32 to vector<8x128xf32>
    %cst_3 = arith.constant 0.142857149 : f32
    %11 = vector.broadcast %cst_3 : f32 to vector<8x128xf32>
    %12 = arith.subf %11, %0 : vector<8x128xf32>
    %cst_4 = arith.constant 0.000000e+00 : f32
    %13 = vector.broadcast %cst_4 : f32 to vector<8x128xf32>
    %14 = arith.mulf %12, %13 : vector<8x128xf32>
    %cst_5 = arith.constant 0.000000e+00 : f32
    %15 = vector.broadcast %cst_5 : f32 to vector<8x128xf32>
    %16 = arith.subf %0, %15 : vector<8x128xf32>
    %cst_6 = arith.constant 3.15900302 : f32
    %17 = vector.broadcast %cst_6 : f32 to vector<8x128xf32>
    %18 = arith.mulf %16, %17 : vector<8x128xf32>
    %19 = arith.addf %14, %18 : vector<8x128xf32>
    %c0_i32_7 = arith.constant 0 : i32
    %20 = vector.broadcast %c0_i32_7 : i32 to vector<8x128xi32>
    %21 = arith.cmpi eq, %9, %20 : vector<8x128xi32>
    %22 = arith.select %21, %19, %10 : vector<8x128xi1>, vector<8x128xf32>
    %cst_8 = arith.constant 0.285714298 : f32
    %23 = vector.broadcast %cst_8 : f32 to vector<8x128xf32>
    %24 = arith.subf %23, %0 : vector<8x128xf32>
    %cst_9 = arith.constant 3.15900302 : f32
    %25 = vector.broadcast %cst_9 : f32 to vector<8x128xf32>
    %26 = arith.mulf %24, %25 : vector<8x128xf32>
    %cst_10 = arith.constant 0.142857149 : f32
    %27 = vector.broadcast %cst_10 : f32 to vector<8x128xf32>
    %28 = arith.subf %0, %27 : vector<8x128xf32>
    %cst_11 = arith.constant 5.79182768 : f32
    %29 = vector.broadcast %cst_11 : f32 to vector<8x128xf32>
    %30 = arith.mulf %28, %29 : vector<8x128xf32>
    %31 = arith.addf %26, %30 : vector<8x128xf32>
    %c1_i32 = arith.constant 1 : i32
    %32 = vector.broadcast %c1_i32 : i32 to vector<8x128xi32>
    %33 = arith.cmpi eq, %9, %32 : vector<8x128xi32>
    %34 = arith.select %33, %31, %22 : vector<8x128xi1>, vector<8x128xf32>
    %cst_12 = arith.constant 0.428571433 : f32
    %35 = vector.broadcast %cst_12 : f32 to vector<8x128xf32>
    %36 = arith.subf %35, %0 : vector<8x128xf32>
    %cst_13 = arith.constant 5.79182768 : f32
    %37 = vector.broadcast %cst_13 : f32 to vector<8x128xf32>
    %38 = arith.mulf %36, %37 : vector<8x128xf32>
    %cst_14 = arith.constant 0.285714298 : f32
    %39 = vector.broadcast %cst_14 : f32 to vector<8x128xf32>
    %40 = arith.subf %0, %39 : vector<8x128xf32>
    %cst_15 = arith.constant 7.467470e+00 : f32
    %41 = vector.broadcast %cst_15 : f32 to vector<8x128xf32>
    %42 = arith.mulf %40, %41 : vector<8x128xf32>
    %43 = arith.addf %38, %42 : vector<8x128xf32>
    %c2_i32 = arith.constant 2 : i32
    %44 = vector.broadcast %c2_i32 : i32 to vector<8x128xi32>
    %45 = arith.cmpi eq, %9, %44 : vector<8x128xi32>
    %46 = arith.select %45, %43, %34 : vector<8x128xi1>, vector<8x128xf32>
    %cst_16 = arith.constant 0.571428597 : f32
    %47 = vector.broadcast %cst_16 : f32 to vector<8x128xf32>
    %48 = arith.subf %47, %0 : vector<8x128xf32>
    %cst_17 = arith.constant 7.467470e+00 : f32
    %49 = vector.broadcast %cst_17 : f32 to vector<8x128xf32>
    %50 = arith.mulf %48, %49 : vector<8x128xf32>
    %cst_18 = arith.constant 0.428571433 : f32
    %51 = vector.broadcast %cst_18 : f32 to vector<8x128xf32>
    %52 = arith.subf %0, %51 : vector<8x128xf32>
    %cst_19 = arith.constant 7.92806148 : f32
    %53 = vector.broadcast %cst_19 : f32 to vector<8x128xf32>
    %54 = arith.mulf %52, %53 : vector<8x128xf32>
    %55 = arith.addf %50, %54 : vector<8x128xf32>
    %c3_i32 = arith.constant 3 : i32
    %56 = vector.broadcast %c3_i32 : i32 to vector<8x128xi32>
    %57 = arith.cmpi eq, %9, %56 : vector<8x128xi32>
    %58 = arith.select %57, %55, %46 : vector<8x128xi1>, vector<8x128xf32>
    %cst_20 = arith.constant 0.714285731 : f32
    %59 = vector.broadcast %cst_20 : f32 to vector<8x128xf32>
    %60 = arith.subf %59, %0 : vector<8x128xf32>
    %cst_21 = arith.constant 7.92806148 : f32
    %61 = vector.broadcast %cst_21 : f32 to vector<8x128xf32>
    %62 = arith.mulf %60, %61 : vector<8x128xf32>
    %cst_22 = arith.constant 0.571428597 : f32
    %63 = vector.broadcast %cst_22 : f32 to vector<8x128xf32>
    %64 = arith.subf %0, %63 : vector<8x128xf32>
    %cst_23 = arith.constant 7.135510e+00 : f32
    %65 = vector.broadcast %cst_23 : f32 to vector<8x128xf32>
    %66 = arith.mulf %64, %65 : vector<8x128xf32>
    %67 = arith.addf %62, %66 : vector<8x128xf32>
    %c4_i32 = arith.constant 4 : i32
    %68 = vector.broadcast %c4_i32 : i32 to vector<8x128xi32>
    %69 = arith.cmpi eq, %9, %68 : vector<8x128xi32>
    %70 = arith.select %69, %67, %58 : vector<8x128xi1>, vector<8x128xf32>
    %cst_24 = arith.constant 0.857142865 : f32
    %71 = vector.broadcast %cst_24 : f32 to vector<8x128xf32>
    %72 = arith.subf %71, %0 : vector<8x128xf32>
    %cst_25 = arith.constant 7.135510e+00 : f32
    %73 = vector.broadcast %cst_25 : f32 to vector<8x128xf32>
    %74 = arith.mulf %72, %73 : vector<8x128xf32>
    %cst_26 = arith.constant 0.714285731 : f32
    %75 = vector.broadcast %cst_26 : f32 to vector<8x128xf32>
    %76 = arith.subf %0, %75 : vector<8x128xf32>
    %cst_27 = arith.constant 5.27839136 : f32
    %77 = vector.broadcast %cst_27 : f32 to vector<8x128xf32>
    %78 = arith.mulf %76, %77 : vector<8x128xf32>
    %79 = arith.addf %74, %78 : vector<8x128xf32>
    %c5_i32 = arith.constant 5 : i32
    %80 = vector.broadcast %c5_i32 : i32 to vector<8x128xi32>
    %81 = arith.cmpi eq, %9, %80 : vector<8x128xi32>
    %82 = arith.select %81, %79, %70 : vector<8x128xi1>, vector<8x128xf32>
    %cst_28 = arith.constant 1.000000e+00 : f32
    %83 = vector.broadcast %cst_28 : f32 to vector<8x128xf32>
    %84 = arith.subf %83, %0 : vector<8x128xf32>
    %cst_29 = arith.constant 5.27839136 : f32
    %85 = vector.broadcast %cst_29 : f32 to vector<8x128xf32>
    %86 = arith.mulf %84, %85 : vector<8x128xf32>
    %cst_30 = arith.constant 0.857142865 : f32
    %87 = vector.broadcast %cst_30 : f32 to vector<8x128xf32>
    %88 = arith.subf %0, %87 : vector<8x128xf32>
    %cst_31 = arith.constant 2.737840e+00 : f32
    %89 = vector.broadcast %cst_31 : f32 to vector<8x128xf32>
    %90 = arith.mulf %88, %89 : vector<8x128xf32>
    %91 = arith.addf %86, %90 : vector<8x128xf32>
    %c6_i32_32 = arith.constant 6 : i32
    %92 = vector.broadcast %c6_i32_32 : i32 to vector<8x128xi32>
    %93 = arith.cmpi eq, %9, %92 : vector<8x128xi32>
    %94 = arith.select %93, %91, %82 : vector<8x128xi1>, vector<8x128xf32>
    %c0_33 = arith.constant 0 : index
    %c0_34 = arith.constant 0 : index
    %95 = vector.load %arg2[%c0_33, %c0_34] : memref<8x128xf32, #tpu.memory_space<vmem>>, vector<8x128xf32>
    tpu.vector_store %arg2[%c0_33, %c0_34], %94 {strides = array<i32>} : memref<8x128xf32, #tpu.memory_space<vmem>>, vector<8x128xf32>,
    return
  }
  func.func @transform_0(%arg0: i32) -> (i32, i32) {
    %c0_i32 = arith.constant 0 : i32
    %c0_i32_0 = arith.constant 0 : i32
    return %arg0, %c0_i32 : i32, i32
  }
  func.func @transform_1(%arg0: i32) -> (i32, i32) {
    %c0_i32 = arith.constant 0 : i32
    %c0_i32_0 = arith.constant 0 : i32
    return %arg0, %c0_i32 : i32, i32
  }
}

</mosaic_0001>

<bundles_post_ra>
// kernel: tpu_custom_call.1
= control target key start
LH: loop header
LB: loop body
LE: loop exit
PB: predicated region body
PF: predicated region fallthrough
CT: control target
= control target key end

     0   :  { %6 = vsyncpa [#allocation3], 0  ;;  %s180_s0 = inlined_call_operand.hbm [shape: f32[8,128], index: 0, kind: input, shape index: {}]   ;;  %s181_s1 = inlined_call_operand.hbm [shape: f32[8,128], index: 1, kind: output, shape index: {}]  }
   0x1   :  { %7 = vsyncpa [#allocation4], 0  ;;  %s13_s8 = sshll.u32 %s180_s0, 4  ;;  %s162_s9 = smov [#allocation2]   ;;  %s14_s8 = int_to_ptr.hbm [resolvable:$true] %s13_s8 }
   0x2   :  { %s15_s10 = sshll.u32 %s162_s9, 4  ;;  %s16_s10 = int_to_ptr.vmem [resolvable:$true] %s15_s10 }
   0x3   :  { %18 = dma.hbm_to_vmem [thread:$0]  %s14_s8, 128, %s16_s10, [#allocation3]  }
   0x4   :  { %158 = dma.done.wait [#allocation3], 128  }
   0x5   :  { %159 = vsyncadd [#allocation3], 4294967168  ;;  %v23_v0 = vld [vmem:[#allocation2] sm:$0xff]  ;;  %s163_s0 = smov [#allocation5]   ;;  %s87_s14 = sshll.u32 %s181_s1, 4  ;;  %s88_s14 = int_to_ptr.hbm [resolvable:$true] %s87_s14 }
   0x6   :  { %v24_v1 = vmul.f32 7.0, %v23_v0  ;;  %v31_v2 = vsub.f32 0.14285715, %v23_v0  ;;  %v37_v4 = vsub.f32 0.2857143, %v23_v0  ;;  %v72_v14 = vsub.f32 1.0, %v23_v0 }
   0x7   :  { %v33_v5 = vmul.f32 3.159003, %v23_v0  ;;  %v97_v6 = vadd.f32 -0.14285715, %v23_v0  ;;  %v44_v7 = vsub.f32 0.42857143, %v23_v0 }
   0x8   :  { %v25_v3 = vadd.f32 1e-05, %v24_v1  ;;  %v98_v10 = vadd.f32 -0.2857143, %v23_v0  ;;  %v32_v11 = vmul.f32 0.0, %v31_v2  ;;  %s85_s11 = sshll.u32 %s163_s0, 4  ;;  %s86_s11 = int_to_ptr.vmem [resolvable:$true] %s85_s11 }
   0x9   :  { %v51_v12 = vsub.f32 0.5714286, %v23_v0  ;;  %v99_v13 = vadd.f32 -0.42857143, %v23_v0  ;;  %v38_v16 = vmul.f32 3.159003, %v37_v4 }
   0xa   :  { %vm103_vm0 = vcmp.lt.s32.totalorder %v25_v3, 0  ;;  %v104_v8 = vceil.f32 %v25_v3  ;;  %v105_v9 = vfloor.f32 %v25_v3  ;;  %v58_v17 = vsub.f32 0.71428573, %v23_v0 }
   0xb   :  { %v100_v18 = vadd.f32 -0.5714286, %v23_v0  ;;  %v40_v20 = vmul.f32 5.7918277, %v97_v6  ;;  %v45_v21 = vmul.f32 5.7918277, %v44_v7  ;;  %v34_v29 = vadd.f32 %v33_v5, %v32_v11 }
   0xc   :  { %v106_v15 = vsel %vm103_vm0, %v104_v8, %v105_v9  ;;  %v65_v22 = vsub.f32 0.85714287, %v23_v0  ;;  %v47_v23 = vmul.f32 7.46747, %v98_v10  ;;  %v52_v24 = vmul.f32 7.46747, %v51_v12 }
   0xd   :  { %v107_v19 = vcvt.f32.s32 %v106_v15  ;;  %v54_v25 = vmul.f32 7.9280615, %v99_v13  ;;  %v59_v26 = vmul.f32 7.9280615, %v58_v17  ;;  %v101_v27 = vadd.f32 -0.71428573, %v23_v0 }
   0xe   :  { %v61_v30 = vmul.f32 7.13551, %v100_v18  ;;  %v102_v31 = vadd.f32 -0.85714287, %v23_v0  ;;  %v41_v32 = vadd.f32 %v40_v20, %v38_v16  ;;  %v66_v33 = vmul.f32 7.13551, %v65_v22 }
   0xf   :  { %vm27_vm1 = vcmp.gt.s32.totalorder %v107_v19, 0  ;;  %v68_v34 = vmul.f32 5.2783914, %v101_v27  ;;  %v48_v36 = vadd.f32 %v47_v23, %v45_v21  ;;  %v73_v37 = vmul.f32 5.2783914, %v72_v14 }
  0x10   :  { %v28_v28 = vsel %vm27_vm1, %v107_v19, 0  ;;  %v75_v38 = vmul.f32 2.73784, %v102_v31  ;;  %v55_v39 = vadd.f32 %v54_v25, %v52_v24  ;;  %v62_v41 = vadd.f32 %v61_v30, %v59_v26 }
  0x11   :  { %vm29_vm2 = vcmp.lt.s32.totalorder %v28_v28, 6  ;;  %v69_v43 = vadd.f32 %v68_v34, %v66_v33 }
  0x12   :  { %v30_v35 = vsel %vm29_vm2, %v28_v28, 6  ;;  %v76_v45 = vadd.f32 %v75_v38, %v73_v37 }
  0x13   :  { %vm35_vm3 = vcmp.eq.s32.totalorder %v30_v35, 0  ;;  %vm42_vm4 = vcmp.eq.s32.totalorder %v30_v35, 1  ;;  %vm49_vm5 = vcmp.eq.s32.totalorder %v30_v35, 2  ;;  %vm56_vm6 = vcmp.eq.s32.totalorder %v30_v35, 3 }
  0x14   :  { %v36_v40 = vsel %vm35_vm3, %v34_v29, 0.0  ;;  %vm63_vm7 = vcmp.eq.s32.totalorder %v30_v35, 4  ;;  %vm70_vm8 = vcmp.eq.s32.totalorder %v30_v35, 5  ;;  %vm77_vm9 = vcmp.eq.s32.totalorder %v30_v35, 6 }
  0x15   :  { %v43_v42 = vsel %vm42_vm4, %v41_v32, %v36_v40 }
  0x16   :  { %v50_v44 = vsel %vm49_vm5, %v48_v36, %v43_v42 }
  0x17   :  { %v57_v46 = vsel %vm56_vm6, %v55_v39, %v50_v44 }
  0x18   :  { %v64_v47 = vsel %vm63_vm7, %v62_v41, %v57_v46 }
  0x19   :  { %v71_v48 = vsel %vm70_vm8, %v69_v43, %v64_v47 }
  0x1a   :  { %v78_v49 = vsel %vm77_vm9, %v76_v45, %v71_v48 }
  0x1b   :  { %79 = vst [vmem:[#allocation5] sm:$0xff] %v78_v49 }
  0x1c   :  { %90 = dma.vmem_to_hbm [thread:$0]  %s86_s11, 128, %s88_s14, [#allocation4]  }
  0x1d   :  { %160 = dma.done.wait [#allocation4], 128  }
  0x1e   :  { %161 = vsyncadd [#allocation4], 4294967168 }
  0x1f   :  { %95 = vsyncpa [#allocation3], 1 }
  0x20   :  { %96 = vsyncpa [#allocation4], 1 }

</bundles_post_ra>
